<compile_context>
chip_gen: v7x
topology: tpu7x:2x2x1
jax: 0.10.0
libtpu: 0.0.40
codegen_flags: <defaults>
</compile_context>

<pallas_src>
import functools

import jax
import jax.numpy as jnp
from jax import lax
from jax.experimental import pallas as pl
from jax.experimental.pallas import tpu as pltpu


# ---------------------------------------------------------------------------
# Per-generation configuration (VMEM limit, tile target, bf16-exp).
# ---------------------------------------------------------------------------
def _tpu_config():
    kind = ""
    try:
        kind = jax.devices()[0].device_kind.lower()
    except Exception:
        pass
    vmem_bytes = None
    try:
        vmem_bytes = int(pltpu.get_tpu_info().vmem_capacity_bytes)
    except Exception:
        vmem_bytes = None
    if vmem_bytes is None:
        # v5e / v6e: 128 MiB VMEM per core; v7x: 64 MiB.
        if ("v5" in kind) or ("v6" in kind):
            vmem_bytes = 128 * 1024 * 1024
        else:
            vmem_bytes = 64 * 1024 * 1024
    vmem_limit = min(int(vmem_bytes * 0.85), 110 * 1024 * 1024)
    # v6e: 256-wide MXU + 128 MiB VMEM -> larger q tiles pay off.
    # v5e: 128-wide MXU -> 128 rows already full width.  v7x: VMEM-constrained.
    tq_target = 256 if "v6" in kind else 128
    # bf16 EUP exists on v6e / v7x; keep exp in f32 on v5e and older.
    bf16_exp = ("v6" in kind) or ("v7" in kind) or ("7x" in kind)
    return dict(vmem_limit=vmem_limit, tq_target=tq_target, bf16_exp=bf16_exp)


# ---------------------------------------------------------------------------
# Kernel 1: fused QKV projection (all heads at once, q columns pre-scaled).
# ---------------------------------------------------------------------------
def _qkv_proj_kernel(x_ref, w_ref, q_ref, k_ref, v_ref, *, d_model, precision):
    # x_ref: (tp, D) mxu_dtype; w_ref: (D, 3D) mxu_dtype (resident in VMEM)
    qkv = jnp.dot(x_ref[...], w_ref[...],
                  preferred_element_type=jnp.float32,
                  precision=precision)                       # (tp, 3D) f32
    q_ref[...] = qkv[:, :d_model].astype(q_ref.dtype)
    k_ref[...] = qkv[:, d_model:2 * d_model].astype(k_ref.dtype)
    v_ref[...] = qkv[:, 2 * d_model:].astype(v_ref.dtype)


# ---------------------------------------------------------------------------
# Kernel 2: softmax(q k^T) v, per head (head-grouped matmuls).
# ---------------------------------------------------------------------------
def _attention_kernel(q_ref, k_ref, v_ref, o_ref, acc_ref, *,
                      heads, dh, group, n_valid,
                      mxu_dtype, exp_dtype, approx_recip, precision):
    # q_ref: (tq, D) mxu_dtype (pre-scaled), k_ref/v_ref: (n_pad, D) mxu_dtype
    # o_ref: (tq, D) out dtype; acc_ref: (tq, D) f32 VMEM scratch
    tq = q_ref.shape[0]
    n_pad = k_ref.shape[0]
    masked = n_pad > n_valid
    neg = jnp.float32(-1e30)

    def softmax_rows(sim):
        # numerically stable softmax over the last (key) axis, f32 accumulation
        sim = sim - jnp.max(sim, axis=-1, keepdims=True)
        p = jnp.exp(sim.astype(exp_dtype)).astype(jnp.float32)
        denom = jnp.sum(p, axis=-1, keepdims=True)
        if approx_recip:
            return p * pl.reciprocal(denom, approx=True)     # EUP slot
        return p / denom

    if group == 1:
        # dh >= 128 (or a single head): per-head 2-D matmuls are already full
        # MXU width and the lane slices below are 128-aligned ref views.
        mask = None
        if masked:
            mask = lax.broadcasted_iota(jnp.int32, (1, n_pad), 1) < n_valid
        for h in range(heads):                               # static unroll
            c0 = h * dh
            q_h = q_ref[:, c0:c0 + dh]                       # (tq, dh)
            k_h = k_ref[:, c0:c0 + dh]                       # (n_pad, dh)
            v_h = v_ref[:, c0:c0 + dh]                       # (n_pad, dh)
            # sim = einsum('i d, j d -> i j'), no explicit k.T
            sim = lax.dot_general(q_h, k_h, (((1,), (1,)), ((), ())),
                                  preferred_element_type=jnp.float32,
                                  precision=precision)       # (tq, n_pad)
            if masked:
                sim = jnp.where(mask, sim, neg)
            attn = softmax_rows(sim)
            out_h = jnp.dot(attn.astype(mxu_dtype), v_h,
                            preferred_element_type=jnp.float32,
                            precision=precision)             # (tq, dh)
            acc_ref[:, c0:c0 + dh] = out_h
    else:
        # dh < 128: batch `group` heads per dot_general so loads from the
        # lane-dense q/k/v refs are 128-lane aligned stripes and each group's
        # result is written back as one contiguous accumulator stripe.
        gdh = group * dh
        mask = None
        if masked:
            mask = lax.broadcasted_iota(jnp.int32, (1, 1, n_pad), 2) < n_valid
        for g0 in range(heads // group):                     # static unroll
            c0 = g0 * gdh
            q_g = q_ref[:, c0:c0 + gdh].reshape(tq, group, dh)
            k_g = k_ref[:, c0:c0 + gdh].reshape(n_pad, group, dh)
            v_g = v_ref[:, c0:c0 + gdh].reshape(n_pad, group, dh)
            sim = jnp.einsum('qgd,kgd->gqk', q_g, k_g,
                             preferred_element_type=jnp.float32,
                             precision=precision)            # (g, tq, n_pad)
            if masked:
                sim = jnp.where(mask, sim, neg)
            attn = softmax_rows(sim)
            ctx = jnp.einsum('gqk,kgd->qgd', attn.astype(mxu_dtype), v_g,
                             preferred_element_type=jnp.float32,
                             precision=precision)            # (tq, g, dh)
            acc_ref[:, c0:c0 + gdh] = ctx.reshape(tq, gdh)

    # One cast + one full-width, lane-dense, unmasked store.
    o_ref[...] = acc_ref[...].astype(o_ref.dtype)


# ---------------------------------------------------------------------------
# Wrapper
# ---------------------------------------------------------------------------
def attention_pallas(x, w_qkv, heads, *, mxu_dtype=jnp.bfloat16, tq=None):
    """x: (B, N, D); w_qkv: torch-style nn.Linear weight (3D, D) (y = x @ W.T)."""
    B, N, D = x.shape
    assert D % heads == 0, "dim must be divisible by heads"
    dh = D // heads
    scale = float(dh) ** (-0.5)

    cfg = _tpu_config()
    exact = jnp.dtype(mxu_dtype) == jnp.dtype(jnp.float32)
    precision = lax.Precision.HIGHEST if exact else None
    approx_recip = not exact
    exp_dtype = jnp.bfloat16 if (cfg["bf16_exp"] and not exact) else jnp.float32

    # Head grouping: batch 128//dh heads per matmul so lane slices stay
    # 128-aligned (group == 1 when dh >= 128).
    if dh >= 128:
        group = 1
    else:
        group = max(1, min(heads, 128 // dh))
        while heads % group != 0:
            group -= 1

    # Fused, pre-transposed weight, columns ordered [q | k | v]; attention
    # scale folded into the q columns at trace time.
    w_fused = w_qkv.T                                                 # (D, 3D)
    col_scale = jnp.concatenate([
        jnp.full((D,), scale, dtype=w_fused.dtype),
        jnp.ones((2 * D,), dtype=w_fused.dtype)])
    w_fused = (w_fused * col_scale[None, :]).astype(mxu_dtype)

    # Query-row tiling; pad ragged N to a tile multiple instead of falling
    # back to a single full-sequence tile.
    if tq is None:
        tq = cfg["tq_target"]
    tq = max(8, (int(tq) + 7) // 8 * 8)
    if N <= tq:
        tq = N
        n_pad = N
    else:
        n_pad = int(pl.cdiv(N, tq)) * tq
    num_q_tiles = n_pad // tq

    # Cast x to the MXU dtype in the wrapper (halves the x HBM->VMEM DMA).
    x_p = x.astype(mxu_dtype)
    if n_pad != N:
        x_p = jnp.pad(x_p, ((0, 0), (0, n_pad - N), (0, 0)))

    vmem_limit = cfg["vmem_limit"]

    # ---------------- kernel 1: fused QKV projection --------------------------
    q_all, k_all, v_all = pl.pallas_call(
        functools.partial(_qkv_proj_kernel, d_model=D, precision=precision),
        out_shape=[jax.ShapeDtypeStruct((B, n_pad, D), mxu_dtype)] * 3,
        grid_spec=pltpu.PrefetchScalarGridSpec(
            num_scalar_prefetch=0,
            grid=(B, num_q_tiles),
            in_specs=[
                pl.BlockSpec((None, tq, D), lambda b, i: (b, i, 0)),
                # fused weight: constant block index -> fetched once, resident
                pl.BlockSpec((D, 3 * D), lambda b, i: (0, 0)),
            ],
            out_specs=[pl.BlockSpec((None, tq, D), lambda b, i: (b, i, 0))] * 3,
        ),
        compiler_params=pltpu.CompilerParams(
            dimension_semantics=("parallel", "arbitrary"),
            vmem_limit_bytes=vmem_limit),
    )(x_p, w_fused)

    # ---------------- kernel 2: attention -------------------------------------
    kernel = functools.partial(
        _attention_kernel,
        heads=heads, dh=dh, group=group, n_valid=N,
        mxu_dtype=mxu_dtype, exp_dtype=exp_dtype,
        approx_recip=approx_recip, precision=precision)

    out = pl.pallas_call(
        kernel,
        out_shape=jax.ShapeDtypeStruct((B, n_pad, D), x.dtype),
        grid_spec=pltpu.PrefetchScalarGridSpec(
            num_scalar_prefetch=0,
            grid=(B, num_q_tiles),
            in_specs=[
                pl.BlockSpec((None, tq, D), lambda b, qi: (b, qi, 0)),    # q tile
                pl.BlockSpec((None, n_pad, D), lambda b, qi: (b, 0, 0)),  # k (resident per b)
                pl.BlockSpec((None, n_pad, D), lambda b, qi: (b, 0, 0)),  # v (resident per b)
            ],
            out_specs=pl.BlockSpec((None, tq, D), lambda b, qi: (b, qi, 0)),
            scratch_shapes=[pltpu.VMEM((tq, D), jnp.float32)],
        ),
        compiler_params=pltpu.CompilerParams(
            dimension_semantics=("parallel", "arbitrary"),
            vmem_limit_bytes=vmem_limit),
    )(q_all, k_all, v_all)

    if n_pad != N:
        out = out[:, :N, :]
    return out


# ---------------------------------------------------------------------------
# Pure-JAX reference mirroring the PyTorch forward (f32, HIGHEST precision).
# ---------------------------------------------------------------------------
def attention_reference(x, w_qkv, heads):
    B, N, D = x.shape
    dh = D // heads
    scale = (D / heads) ** (-0.5)
    hp = lax.Precision.HIGHEST
    qkv = jnp.einsum('bnd,ed->bne', x, w_qkv, precision=hp)           # (B, N, 3D)
    q, k, v = jnp.split(qkv, 3, axis=-1)

    def to_heads(t):
        return t.reshape(B, N, heads, dh).transpose(0, 2, 1, 3)       # (B,H,N,dh)

    q, k, v = map(to_heads, (q, k, v))
    sim = jnp.einsum('bhid,bhjd->bhij', q, k, precision=hp) * scale
    attn = jax.nn.softmax(sim, axis=-1)
    out = jnp.einsum('bhij,bhjd->bhid', attn, v, precision=hp)
    return out.transpose(0, 2, 1, 3).reshape(B, N, D)


if __name__ == "__main__":
    key = jax.random.PRNGKey(0)
    k1, k2, k3, k4 = jax.random.split(key, 4)

    # ---- Config 1: module-default small shapes (dh=4 -> grouped-head path) ----
    B, N, dim, heads = 2, 8, 32, 8
    x = jax.random.normal(k1, (B, N, dim), dtype=jnp.float32)
    # torch nn.Linear(dim, 3*dim, bias=False) weight shape: (3*dim, dim)
    w_qkv = (jax.random.normal(k2, (3 * dim, dim), dtype=jnp.float32)
             / jnp.sqrt(dim))

    ref = attention_reference(x, w_qkv, heads)

    out_f32 = attention_pallas(x, w_qkv, heads, mxu_dtype=jnp.float32)
    jax.block_until_ready(out_f32)
    assert out_f32.shape == (B, N, dim)
    assert jnp.allclose(out_f32, ref, atol=5e-3, rtol=5e-3), "f32 mismatch (cfg1)"

    out_bf16 = attention_pallas(x, w_qkv, heads)
    jax.block_until_ready(out_bf16)
    assert out_bf16.shape == (B, N, dim)
    assert jnp.allclose(out_bf16, ref, atol=5e-2, rtol=5e-2), "bf16 mismatch (cfg1)"

    # ---- Config 2: dh=128 (per-head path), ragged N -> padded/masked tiles ----
    B2, N2, dim2, heads2 = 1, 200, 256, 2
    x2 = jax.random.normal(k3, (B2, N2, dim2), dtype=jnp.float32)
    w2 = (jax.random.normal(k4, (3 * dim2, dim2), dtype=jnp.float32)
          / jnp.sqrt(dim2))
    ref2 = attention_reference(x2, w2, heads2)

    out2_f32 = attention_pallas(x2, w2, heads2, mxu_dtype=jnp.float32, tq=128)
    jax.block_until_ready(out2_f32)
    assert out2_f32.shape == (B2, N2, dim2)
    assert jnp.allclose(out2_f32, ref2, atol=5e-3, rtol=5e-3), "f32 mismatch (cfg2)"

    out2_bf16 = attention_pallas(x2, w2, heads2, tq=128)
    jax.block_until_ready(out2_bf16)
    assert out2_bf16.shape == (B2, N2, dim2)
    assert jnp.allclose(out2_bf16, ref2, atol=1e-1, rtol=1e-1), "bf16 mismatch (cfg2)"

    print("KERNEL_OK")
</pallas_src>

<mosaic_0001>
module attributes {stable_mosaic.version = 11 : i64} {
  func.func @_qkv_proj_kernel(%arg0: i32, %arg1: i32, %arg2: memref<1x8x32xf32, #tpu.memory_space<vmem>>, %arg3: memref<32x96xf32, #tpu.memory_space<vmem>>, %arg4: memref<1x8x32xf32, #tpu.memory_space<vmem>>, %arg5: memref<1x8x32xf32, #tpu.memory_space<vmem>>, %arg6: memref<1x8x32xf32, #tpu.memory_space<vmem>>) attributes {dimension_semantics = [#tpu.dimension_semantics<parallel>, #tpu.dimension_semantics<arbitrary>], iteration_bounds = array<i64: 2, 1>, scalar_prefetch = 0 : i64, scratch_operands = 0 : i64, tpu.core_type = #tpu.core_type<tc>, window_params = [{transform_indices = @transform_0, window_bounds = array<i64: 1, 8, 32>}, {pipeline_mode = #tpu.pipeline_mode<synchronous>, transform_indices = @transform_1, window_bounds = array<i64: 32, 96>}, {transform_indices = @transform_2, window_bounds = array<i64: 1, 8, 32>}, {transform_indices = @transform_3, window_bounds = array<i64: 1, 8, 32>}, {transform_indices = @transform_4, window_bounds = array<i64: 1, 8, 32>}]} {
    %c0 = arith.constant 0 : index
    %c0_0 = arith.constant 0 : index
    %c0_1 = arith.constant 0 : index
    %0 = vector.load %arg2[%c0, %c0_0, %c0_1] : memref<1x8x32xf32, #tpu.memory_space<vmem>>, vector<1x8x32xf32>
    %1 = vector.shape_cast %0 : vector<1x8x32xf32> to vector<8x32xf32>
    %c0_2 = arith.constant 0 : index
    %c0_3 = arith.constant 0 : index
    %2 = vector.load %arg3[%c0_2, %c0_3] : memref<32x96xf32, #tpu.memory_space<vmem>>, vector<32x96xf32>
    %cst = arith.constant dense<0.000000e+00> : vector<8x96xf32>
    %3 = tpu.matmul %1, %2, %cst {dimension_numbers = #tpu.dot_dimension_numbers<[1], [0], [0], [1], [0, 0, 1, 1], [], []>, precision = #tpu.contract_precision<fp32>} : vector<8x32xf32>, vector<32x96xf32>, vector<8x96xf32> -> vector<8x96xf32>
    %4 = vector.extract_strided_slice %3 {offsets = [0, 0], sizes = [8, 32], strides = [1, 1]} : vector<8x96xf32> to vector<8x32xf32>
    %c0_4 = arith.constant 0 : index
    %c0_5 = arith.constant 0 : index
    %c0_6 = arith.constant 0 : index
    %5 = vector.load %arg4[%c0_4, %c0_5, %c0_6] : memref<1x8x32xf32, #tpu.memory_space<vmem>>, vector<1x8x32xf32>
    %6 = vector.shape_cast %5 : vector<1x8x32xf32> to vector<8x32xf32>
    %7 = vector.shape_cast %4 : vector<8x32xf32> to vector<1x8x32xf32>
    tpu.vector_store %arg4[%c0_4, %c0_5, %c0_6], %7 {strides = array<i32>} : memref<1x8x32xf32, #tpu.memory_space<vmem>>, vector<1x8x32xf32>,
    %8 = vector.extract_strided_slice %3 {offsets = [0, 32], sizes = [8, 32], strides = [1, 1]} : vector<8x96xf32> to vector<8x32xf32>
    %c0_7 = arith.constant 0 : index
    %c0_8 = arith.constant 0 : index
    %c0_9 = arith.constant 0 : index
    %9 = vector.load %arg5[%c0_7, %c0_8, %c0_9] : memref<1x8x32xf32, #tpu.memory_space<vmem>>, vector<1x8x32xf32>
    %10 = vector.shape_cast %9 : vector<1x8x32xf32> to vector<8x32xf32>
    %11 = vector.shape_cast %8 : vector<8x32xf32> to vector<1x8x32xf32>
    tpu.vector_store %arg5[%c0_7, %c0_8, %c0_9], %11 {strides = array<i32>} : memref<1x8x32xf32, #tpu.memory_space<vmem>>, vector<1x8x32xf32>,
    %12 = vector.extract_strided_slice %3 {offsets = [0, 64], sizes = [8, 32], strides = [1, 1]} : vector<8x96xf32> to vector<8x32xf32>
    %c0_10 = arith.constant 0 : index
    %c0_11 = arith.constant 0 : index
    %c0_12 = arith.constant 0 : index
    %13 = vector.load %arg6[%c0_10, %c0_11, %c0_12] : memref<1x8x32xf32, #tpu.memory_space<vmem>>, vector<1x8x32xf32>
    %14 = vector.shape_cast %13 : vector<1x8x32xf32> to vector<8x32xf32>
    %15 = vector.shape_cast %12 : vector<8x32xf32> to vector<1x8x32xf32>
    tpu.vector_store %arg6[%c0_10, %c0_11, %c0_12], %15 {strides = array<i32>} : memref<1x8x32xf32, #tpu.memory_space<vmem>>, vector<1x8x32xf32>,
    return
  }
  func.func @transform_0(%arg0: i32, %arg1: i32) -> (i32, i32, i32) {
    %c0_i32 = arith.constant 0 : i32
    %c0_i32_0 = arith.constant 0 : i32
    return %arg0, %arg1, %c0_i32 : i32, i32, i32
  }
  func.func @transform_1(%arg0: i32, %arg1: i32) -> (i32, i32) {
    %c0_i32 = arith.constant 0 : i32
    %c0_i32_0 = arith.constant 0 : i32
    %c0_i32_1 = arith.constant 0 : i32
    return %c0_i32, %c0_i32_0 : i32, i32
  }
  func.func @transform_2(%arg0: i32, %arg1: i32) -> (i32, i32, i32) {
    %c0_i32 = arith.constant 0 : i32
    %c0_i32_0 = arith.constant 0 : i32
    return %arg0, %arg1, %c0_i32 : i32, i32, i32
  }
  func.func @transform_3(%arg0: i32, %arg1: i32) -> (i32, i32, i32) {
    %c0_i32 = arith.constant 0 : i32
    %c0_i32_0 = arith.constant 0 : i32
    return %arg0, %arg1, %c0_i32 : i32, i32, i32
  }
  func.func @transform_4(%arg0: i32, %arg1: i32) -> (i32, i32, i32) {
    %c0_i32 = arith.constant 0 : i32
    %c0_i32_0 = arith.constant 0 : i32
    return %arg0, %arg1, %c0_i32 : i32, i32, i32
  }
}

</mosaic_0001>

<bundles_post_ra>
// kernel: tpu_custom_call.1
= control target key start
LH: loop header
LB: loop body
LE: loop exit
PB: predicated region body
PF: predicated region fallthrough
CT: control target
= control target key end

     0   :  { %10 = vsyncpa [#allocation3], 0  ;;  %s1793_s0 = inlined_call_operand.hbm [shape: f32[2,8,32], index: 0, kind: input, shape index: {}]   ;;  %s1794_s1 = inlined_call_operand.hbm [shape: f32[32,96], index: 1, kind: input, shape index: {}]   ;;  %s1795_s2 = inlined_call_operand.hbm [shape: f32[2,8,32], index: 2, kind: output, shape index: {0}]   ;;  %s1796_s3 = inlined_call_operand.hbm [shape: f32[2,8,32], index: 3, kind: output, shape index: {1}]   ;;  %s1797_s4 = inlined_call_operand.hbm [shape: f32[2,8,32], index: 4, kind: output, shape index: {2}]  }
   0x1   :  { %12 = vsyncpa [#allocation3 + $0x1], 0 }
   0x2   :  { %13 = vsyncpa [#allocation6], 0 }
   0x3   :  { %14 = vsyncpa [#allocation4], 0 }
   0x4   :  { %16 = vsyncpa [#allocation4 + $0x1], 0 }
   0x5   :  { %17 = vsyncpa [#allocation9], 0 }
   0x6   :  { %19 = vsyncpa [#allocation9 + $0x1], 0  ;;  %s1472_s15 = smov 0   ;;  %s1474_s16 = smov 0  }
   0x7   :  { %s1476_s17 = smov 0   ;;  %s1478_s18 = smov 0  }
   0x8   :  { %s1480_s19 = smov 0   ;;  %s1482_s20 = smov 0  }
   0x9 LB: > { %s1503_s21 = sadd.s32 4294967295, %s1433_s20   ;;  %s978_s22 = sadd.s32 4294967294, %s1433_s20   ;;  %s1433_s20 = sphi %s1482_s20, %s25_s20   ;;  %s1429_s19 = sphi %s1480_s19, %s1819_s19   ;;  %s1425_s18 = sphi %s1478_s18, %s1818_s18   ;;  %s1421_s17 = sphi %s1476_s17, %s1817_s17   ;;  %s1417_s16 = sphi %s1474_s16, %s1816_s16   ;;  %s1413_s15 = sphi %s1472_s15, %s1815_s15  }
   0xa   : > { %p59_p0 = scmp.ne.s32.totalorder %s1417_s16, %s1413_s15  ;;  %p1798_p1 = scmp.eq.s32.totalorder %s1503_s21, 0 }
   0xb   : > { %p112_p3 = scmp.eq.s32.totalorder %s978_s22, 1  ;;  %p979_p5 = scmp.ge.s32.totalorder %s1433_s20, 1 }
   0xc   : > { %p1514_p4 = por %p1798_p1, %p59_p0  ;;  %p175_p7 = scmp.lt.s32.totalorder %s1433_s20, 3 }
   0xd   : > { %p1519_p6 = por %p112_p3, %p59_p0  ;;  %s1435_s26 = smov [#allocation5]  }
   0xe   : > { %s1801_s23 = scalar_select %p1514_p4, 1, 0 }
   0xf   : > { %s1802_s24 = scalar_select %p1519_p6, 1, 0 }
  0x10   : > { %p1524_p8 = pnand %p979_p5, %p175_p7  ;;  %s187_s27 = sshll.u32 %s1435_s26, 4  ;;  %s188_s27 = int_to_ptr.vmem [resolvable:$true] %s187_s27 }
  0x11   : > { %s37_s29 = sadd.s32 1, %s1429_s19  ;;  %s1229_s6 = scalar_lea.hbm %s1794_s1, 512 }
  0x12   : > { %s1803_s25 = scalar_select %p1524_p8, 1, 0 }
  0x13   : > { %p1151_p9 = pneg %p1524_p8  ;;  %p1230_p12 = scmp.ne.s32.totalorder %s1794_s1, %s1229_s6 }
  0x14   : > { %p1236_p5 = scmp.lt.u32.totalorder %s1229_s6, %s1794_s1 }
  0x15   : > { %p1533_p11 = pnand %p1151_p9, %p1798_p1 }
  0x17   : > { %p1231_p13 = pneg %p1533_p11 }
  0x19   : > { %p1232_p0 = pnand %p1231_p13, %p1230_p12 }
  0x1b   : > { %p1233_p3 = pneg %p1232_p0 }
  0x1d   : > { %p1238_p7 = pnand %p1236_p5, %p1233_p3 }
  0x1f   : > { %1241 = shalt.err (!%p1238_p7)
}
  0x20   : > { %s1242_s11 = scalar_lea.vmem %s188_s27, 512  ;;  %p1250_p2 = scmp.lt.s32.totalorder %s188_s27, %s188_s27 }
  0x21   : > { %p1243_p9 = scmp.ne.s32.totalorder %s188_s27, %s1242_s11  ;;  %p1251_p6 = scmp.lt.s32.totalorder %s1242_s11, %s1242_s11 }
  0x23   : > { %p1245_p10 = pnand %p1243_p9, %p1231_p13  ;;  %p1252_p4 = por %p1251_p6, %p1250_p2 }
  0x25   : > { %p1246_p1 = pneg %p1245_p10 }
  0x27   : > { %p1253_p8 = pnand %p1252_p4, %p1246_p1 }
  0x29   : > { %1256 = shalt.err (!%p1253_p8)
}
  0x2a   : > { %s1436_s12 = smov 128   ;;  %s1437_s13 = smov 8  }
  0x2b   : > { %1154 = dma.hbm_to_vmem [thread:$0]  (!%p1533_p11), %s1794_s1, 512, %s188_s27, [#allocation6], %s1436_s12, %s1436_s12, %s1437_s13  }
  0x2c   : > { %p39_p1 = scmp.ge.s32.totalorder %s37_s29, 2  ;;  %s46_s30 = sadd.s32 1, %s1421_s17 }
  0x2d   : > { %p53_p2 = scmp.ne.s32.totalorder %s1421_s17, %s1417_s16  ;;  %p54_p4 = scmp.eq.s32.totalorder %s1433_s20, 0 }
  0x2e   : > { %s1821_s29 = smov (%p39_p1, %s37_s29), 0  ;;  %p1806_p8 = scmp.eq.s32.totalorder %s1503_s21, 1 }
  0x2f   : > { %p1560_p6 = por %p54_p4, %p53_p2  ;;  %s41_s28 = ssub.s32 %s1429_s19, %s1821_s29 }
  0x30   : > { %p1566_p10 = por %p1806_p8, %p53_p2  ;;  %p1170_p12 = scmp.lt.s32.totalorder %s1433_s20, 2 }
  0x31   : > { %p44_p11 = scmp.eq.s32.totalorder %s41_s28, 0  ;;  %s201_s27 = sand.u32 1, %s1421_s17  }
  0x32   : > { %s982_s7 = sshll.u32 %s201_s27, 3  ;;  %s983_s9 = sshll.u32 %s1429_s19, 7 }
  0x33   : > { %s1575_s8 = scalar_select %p44_p11, %s1421_s17, %s46_s30  }
  0x34   : > { %s1581_s12 = scalar_lea.hbm %s1793_s0, %s983_s9  ;;  %s205_s13 = scalar_lea.vmem [#allocation2], %s982_s7 }
  0x35   : > { %s213_s14 = sshll.u32 %s205_s13, 4  ;;  %p1587_p13 = pnand %p1170_p12, %p1560_p6  ;;  %s1583_s14 = int_to_ptr.vmem [resolvable:$true] %s213_s14 }
  0x36   : > { %s202_s30 = scalar_lea.sflag [#allocation3], %s201_s27  ;;  %s1257_s28 = scalar_lea.hbm %s1581_s12, 128 }
  0x37   : > { %p1258_p0 = scmp.ne.s32.totalorder %s1581_s12, %s1257_s28  ;;  %p1259_p3 = pneg %p1587_p13 }
  0x38   : > { %s1262_s10 = scalar_lea.hbm %s1793_s0, 256  ;;  %p1263_p9 = scmp.lt.u32.totalorder %s1581_s12, %s1793_s0 }
  0x39   : > { %p1260_p5 = pnand %p1259_p3, %p1258_p0  ;;  %p1264_p1 = scmp.lt.u32.totalorder %s1262_s10, %s1257_s28 }
  0x3a   : > { %p1266_p4 = scmp.lt.u32.totalorder %s1257_s28, %s1581_s12 }
  0x3b   : > { %p1261_p7 = pneg %p1260_p5  ;;  %p1265_p2 = por %p1264_p1, %p1263_p9 }
  0x3d   : > { %p1267_p6 = por %p1266_p4, %p1265_p2 }
  0x3f   : > { %p1268_p8 = pnand %p1267_p6, %p1261_p7 }
  0x41   : > { %1271 = shalt.err (!%p1268_p8)
}
  0x42   : > { %s1272_s27 = scalar_lea.vmem %s1583_s14, 128  ;;  %s1438_s13 = smov [#allocation2]  }
  0x43   : > { %p1273_p12 = scmp.ne.s32.totalorder %s1583_s14, %s1272_s27  ;;  %s1277_s7 = sshll.u32 %s1438_s13, 4  ;;  %s1278_s7 = int_to_ptr.vmem [resolvable:$false] %s1277_s7 }
  0x44   : > { %s1279_s9 = scalar_lea.vmem %s1278_s7, 256  ;;  %p1280_p5 = scmp.lt.s32.totalorder %s1583_s14, %s1278_s7 }
  0x45   : > { %p1275_p11 = pnand %p1273_p12, %p1259_p3  ;;  %p1281_p9 = scmp.lt.s32.totalorder %s1279_s9, %s1272_s27 }
  0x47   : > { %p1276_p0 = pneg %p1275_p11  ;;  %p1282_p1 = por %p1281_p9, %p1280_p5 }
  0x49   : > { %p1283_p2 = pnand %p1282_p1, %p1276_p0 }
  0x4b   : > { %1286 = shalt.err (!%p1283_p2)
}
  0x4c   : > { %1158 = dma.hbm_to_vmem [thread:$0]  (!%p1587_p13), %s1581_s12, 128, %s1583_s14, %s202_s30  }
  0x4d   : > { %p1809_p7 = scmp.ne.s32.totalorder %s1803_s25, 0 }
  0x4e   : > { %s1619_s28 = sand.u32 (!%p1809_p7), 1, %s1417_s16   ;;  %p1810_p3 = scmp.ne.s32.totalorder (!%p1809_p7), %s1801_s23, 0 }
  0x4f   : > { %222 = sbr.rel (%p1809_p7) target bundleno = 486 (0x1e6), region = 28  ;;  %s1622_s10 = sshll.u32 (!%p1809_p7), %s1619_s28, 3 }
  0x50   : > { %s225_s5 = scalar_lea.sflag (!%p1809_p7), [#allocation3], %s1619_s28  ;;  %s228_s11 = scalar_lea.vmem (!%p1809_p7), [#allocation2], %s1622_s10 }
  0x56   : > { %1396 = dma.done.wait (%p1810_p3), %s225_s5, 128  }
  0x57   : > { %1398 = vsyncadd (%p1810_p3), %s225_s5, 4294967168  ;;  %p1811_p13 = scmp.eq.s32.totalorder %s1503_s21, 0 }
  0x59   : > { %1400 = dma.done.wait (%p1811_p13), [#allocation6], 512   ;;  %p1812_p4 = pmov %p1811_p13 }
  0x5a   : > { %v1439_v0 = vmov 0.0|0.0   ;;  %vm1440_vm0 = vmmov 0   ;;  %v1441_v1 = vmov 0.0   ;;  %vm272_vm1 = vcmask 261120   ;;  %v268_v2 = vld [vmem:[#allocation5] sm:$0xff]  ;;  %v269_v3 = vld [vmem:[#allocation5 + $0x8] sm:$0xff] }
  0x5b   : > { %1402 = vsyncadd (%p1812_p4), [#allocation6], 4294966784  ;;  %1094 = vmatprep.subr.bf16.mxu1 %v1439_v0  ;;  %1112 = vmatprep.subr.bf16.mxu0 %v1439_v0  ;;  %v270_v4 = vld [vmem:[#allocation5 + $0x10] sm:$0xff]  ;;  %v277_v5 = vand.u32 4294901760, %v268_v2  ;;  %v280_v6 = vand.u32 4294901760, %v269_v3  ;;  %v271_v7 = vld [vmem:[#allocation5 + $0x18] sm:$0xff] }
  0x5c   : > { %1036 = vmatprep.mubr.msk.f32.mxu1 %vm1440_vm0, %v1441_v1  ;;  %1069 = vmatprep.mubr.msk.f32.mxu0 %vm1440_vm0, %v1441_v1  ;;  %v283_v8 = vand.u32 4294901760, %v270_v4  ;;  %v267_v9 = vld [vmem:[%s228_s11] sm:$0xff]  ;;  %v286_v10 = vand.u32 4294901760, %v271_v7  ;;  %s1660_s23 = sshll.u32 %s1425_s18, 7  ;;  %s252_s25 = scalar_lea.vmem [#allocation7], %s1622_s10 }
  0x5d   : > { %v274_v11 = vsel %vm272_vm1, %v267_v9, 0  ;;  %v1095_v12 = vpack.c.bf16 %v280_v6, %v277_v5  ;;  %v357_v13 = vsub.f32 %v268_v2, %v277_v5  ;;  %v364_v14 = vsub.f32 %v269_v3, %v280_v6  ;;  %s796_s12 = sshll.u32 %s252_s25, 4  ;;  %s1667_s30 = scalar_lea.hbm %s1795_s2, %s1660_s23  ;;  %s1669_s12 = int_to_ptr.vmem [resolvable:$true] %s796_s12 }
  0x5e   : > { %v371_v15 = vsub.f32 %v270_v4, %v283_v8  ;;  %v378_v16 = vsub.f32 %v271_v7, %v286_v10  ;;  %v345_v17 = vand.u32 4294901760, %v274_v11  ;;  %v1098_v18 = vpack.c.bf16 %v286_v10, %v283_v8  ;;  %s1442_s27 = smov 96   ;;  %s772_s18 = scalar_lea.sflag [#allocation4], %s1619_s28 }
  0x5f   : > { %1096 = vmatpush3.bf16.msra.mxu1 %v1095_v12  ;;  %1114 = vmatpush3.bf16.msra.mxu0 %v1095_v12  ;;  %v358_v19 = vand.u32 4294901760, %v357_v13  ;;  %v365_v20 = vand.u32 4294901760, %v364_v14  ;;  %v1107_v39 = vpack.c.bf16 %v364_v14, %v357_v13  ;;  %s1287_s13 = scalar_lea.vmem %s1669_s12, 128  ;;  %s1443_s7 = smov [#allocation7]  }
  0x60   : > { %v372_v21 = vand.u32 4294901760, %v371_v15  ;;  %1097 = vmatprep.subr.bf16.mxu1 %v1439_v0  ;;  %1115 = vmatprep.subr.bf16.mxu0 %v1439_v0  ;;  %v346_v22 = vsub.f32 %v274_v11, %v345_v17  ;;  %v379_v23 = vand.u32 4294901760, %v378_v16  ;;  %v1110_v40 = vpack.c.bf16 %v378_v16, %v371_v15  ;;  %p1288_p6 = scmp.ne.s32.totalorder %s1669_s12, %s1287_s13  ;;  %s1291_s9 = sshll.u32 %s1443_s7, 4  ;;  %s1292_s9 = int_to_ptr.vmem [resolvable:$false] %s1291_s9 }
  0x61   : > { %v359_v24 = vsub.f32 %v357_v13, %v358_v19  ;;  %v366_v25 = vsub.f32 %v364_v14, %v365_v20  ;;  %v1119_v31 = vpack.c.bf16 %v365_v20, %v358_v19  ;;  %s1293_s5 = scalar_lea.vmem %s1292_s9, 256  ;;  %p1294_p11 = scmp.lt.s32.totalorder %s1669_s12, %s1292_s9 }
  0x62   : > { %v373_v26 = vsub.f32 %v371_v15, %v372_v21  ;;  %v347_v27 = vand.u32 4294901760, %v346_v22  ;;  %v380_v28 = vsub.f32 %v378_v16, %v379_v23  ;;  %v1122_v37 = vpack.c.bf16 %v379_v23, %v372_v21  ;;  %p1289_p8 = pnand %p1288_p6, %p1566_p10  ;;  %p1295_p0 = scmp.lt.s32.totalorder %s1293_s5, %s1287_s13 }
  0x63   : > { %1099 = vmatpush3.bf16.msra.mxu1 %v1098_v18  ;;  %1117 = vmatpush3.bf16.msra.mxu0 %v1098_v18  ;;  %v360_v29 = vand.u32 4294901760, %v359_v24  ;;  %v367_v30 = vand.u32 4294901760, %v366_v25 }
  0x64   : > { %v348_v32 = vsub.f32 %v346_v22, %v347_v27  ;;  %1100 = vmatprep.subr.bf16.mxu1 %v1439_v0  ;;  %1118 = vmatprep.subr.bf16.mxu0 %v1439_v0  ;;  %v374_v34 = vand.u32 4294901760, %v373_v26  ;;  %v381_v35 = vand.u32 4294901760, %v380_v28  ;;  %p1290_p12 = pneg %p1289_p8  ;;  %p1296_p5 = por %p1295_p0, %p1294_p11 }
  0x65   : > { %v1101_v33 = vpack.c.bf16 %v367_v30, %v360_v29 }
  0x66   : > { %v349_v36 = vand.u32 4294901760, %v348_v32  ;;  %1070 = vmatmul.mubr.f32.vlgmr.msra.gmra.mrb[0].mxu0 %v347_v27  ;;  %v1104_v38 = vpack.c.bf16 %v381_v35, %v374_v34  ;;  %p1297_p9 = pnand %p1296_p5, %p1290_p12 }
  0x67   : > { %1120 = vmatpush3.bf16.msra.mxu0 %v1119_v31  ;;  %1080 = vmatprep.mubr.msk.f32.mxu0 %vm1440_vm0, %v1441_v1 }
  0x68   : > { %1037 = vmatmul.mubr.f32.vlgmr.msra.gmra.mrb[0].mxu1 %v349_v36  ;;  %1121 = vmatprep.subr.bf16.mxu0 %v1439_v0 }
  0x69   : > { %1102 = vmatpush3.bf16.msra.mxu1 %v1101_v33  ;;  %1047 = vmatprep.mubr.msk.f32.mxu1 %vm1440_vm0, %v1441_v1 }
  0x6a   : > { %1103 = vmatprep.subr.bf16.mxu1 %v1439_v0 }
  0x6b   : > { %1123 = vmatpush3.bf16.msra.mxu0 %v1122_v37 }
  0x6c   : > { %1124 = vmatprep.subr.bf16.mxu0 %v1439_v0 }
  0x6d   : > { %1105 = vmatpush3.bf16.msra.mxu1 %v1104_v38 }
  0x6e   : > { %1106 = vmatprep.subr.bf16.mxu1 %v1439_v0  ;;  %1081 = vmatmul.mubr.f32.vlgmr.msra.gmra.mrb[0].mxu0 %v345_v17 }
  0x6f   : > { %1126 = vmatpush3.bf16.msra.mxu0 %v1095_v12  ;;  %1091 = vmatprep.mubr.msk.f32.mxu0 %vm1440_vm0, %v1441_v1 }
  0x70   : > { %1048 = vmatmul.mubr.f32.vlgmr.msra.gmra.mrb[0].mxu1 %v345_v17  ;;  %1127 = vmatprep.subr.bf16.mxu0 %v1439_v0 }
  0x71   : > { %1108 = vmatpush3.bf16.msra.mxu1 %v1107_v39  ;;  %1058 = vmatprep.mubr.msk.f32.mxu1 %vm1440_vm0, %v1441_v1 }
  0x72   : > { %1109 = vmatprep.subr.bf16.mxu1 %v1439_v0 }
  0x73   : > { %1129 = vmatpush3.bf16.msra.mxu0 %v1098_v18 }
  0x75   : > { %1111 = vmatpush3.bf16.msra.mxu1 %v1110_v40 }
  0x76   : > { %1092 = vmatmul.mubr.f32.vlgmr.msra.gmra.mrb[0].mxu0 %v345_v17 }
  0x78   : > { %1059 = vmatmul.mubr.f32.vlgmr.msra.gmra.mrb[0].mxu1 %v346_v22 }
 0x149   : > { %v757_v41 = vpop.f32.mrb[0].mxu0 }
 0x14a   : > { %v1093_v42 = vpop.f32.mrb[1].mxu0 }
 0x14b   : > { %v522_v43 = vpop.f32.mrb[0].mxu1 }
 0x14c   : > { %v1130_v44 = vadd.f32 %v757_v41, %v522_v43  ;;  %v1060_v45 = vpop.f32.mrb[1].mxu1 }
 0x14e   : > { %763 = vrot.lane.b32.xlu0 %v1130_v44, %s1442_s27  ;;  %761 = vst.msk [vmem:[%s252_s25] sm:$0xff] %vm272_vm1, %v1130_v44 }
 0x14f   : > { %1300 = shalt.err (!%p1297_p9)
}
 0x150   : > { %s1301_s28 = scalar_lea.hbm %s1667_s30, 128  ;;  %s1305_s14 = scalar_lea.hbm %s1795_s2, 256 }
 0x151   : > { %p1302_p1 = scmp.ne.s32.totalorder %s1667_s30, %s1301_s28  ;;  %p1306_p3 = scmp.lt.u32.totalorder %s1667_s30, %s1795_s2 }
 0x152   : > { %p1307_p13 = scmp.lt.u32.totalorder %s1305_s14, %s1301_s28  ;;  %p1309_p6 = scmp.lt.u32.totalorder %s1301_s28, %s1667_s30 }
 0x153   : > { %p1303_p2 = pnand %p1302_p1, %p1566_p10 }
 0x154   : > { %p1308_p4 = por %p1307_p13, %p1306_p3 }
 0x155   : > { %p1304_p7 = pneg %p1303_p2 }
 0x156   : > { %p1310_p8 = por %p1309_p6, %p1308_p4 }
 0x158   : > { %p1311_p12 = pnand %p1310_p8, %p1304_p7 }
 0x15a   : > { %1314 = shalt.err (!%p1311_p12)
}
 0x15b   : > { %1145 = dma.vmem_to_hbm [thread:$0]  (%p1566_p10), %s1669_s12, 128, %s1667_s30, %s772_s18  }
 0x15c   : > { %s1444_s13 = smov 64   ;;  %s776_s7 = sand.u32 1, %s1503_s21  }
 0x15d   : > { %767 = vrot.lane.b32.xlu0 %v1130_v44, %s1444_s13  ;;  %s259_s9 = scalar_lea.vmem [#allocation8], %s1622_s10  ;;  %s1700_s25 = scalar_lea.hbm %s1796_s3, %s1660_s23 }
 0x15e   : > { %s810_s5 = sshll.u32 %s259_s9, 4  ;;  %s266_s14 = scalar_lea.vmem [#allocation10], %s1622_s10  ;;  %s1702_s5 = int_to_ptr.vmem [resolvable:$true] %s810_s5 }
 0x15f   : > { %s1707_s26 = sshll.u32 %s266_s14, 4  ;;  %s1710_s21 = scalar_lea.sflag [#allocation9], %s776_s7  ;;  %s1741_s26 = int_to_ptr.vmem [resolvable:$true] %s1707_s26 }
 0x160   : > { %s1315_s12 = scalar_lea.vmem %s1702_s5, 128  ;;  %s1445_s30 = smov [#allocation8]  }
 0x161   : > { %p1316_p11 = scmp.ne.s32.totalorder %s1702_s5, %s1315_s12  ;;  %s1319_s18 = sshll.u32 %s1445_s30, 4  ;;  %s1320_s18 = int_to_ptr.vmem [resolvable:$false] %s1319_s18 }
 0x162   : > { %s1321_s27 = scalar_lea.vmem %s1320_s18, 256  ;;  %p1322_p9 = scmp.lt.s32.totalorder %s1702_s5, %s1320_s18 }
 0x163   : > { %p1317_p0 = pnand %p1316_p11, %p1566_p10  ;;  %p1323_p1 = scmp.lt.s32.totalorder %s1321_s27, %s1315_s12 }
 0x165   : > { %p1318_p5 = pneg %p1317_p0  ;;  %p1324_p2 = por %p1323_p1, %p1322_p9 }
 0x167   : > { %p1325_p7 = pnand %p1324_p2, %p1318_p5 }
 0x1c0   : > { %v764_v46 = vpop.permute.xlu0 %763 }
 0x1c1   : > { %766 = vst.msk [vmem:[%s259_s9] sm:$0xff] %vm272_vm1, %v764_v46 }
 0x1c2   : > { %1328 = shalt.err (!%p1325_p7)
}
 0x1c3   : > { %s1329_s13 = scalar_lea.hbm %s1700_s25, 128  ;;  %s1333_s28 = scalar_lea.hbm %s1796_s3, 256 }
 0x1c4   : > { %p1330_p3 = scmp.ne.s32.totalorder %s1700_s25, %s1329_s13  ;;  %p1334_p6 = scmp.lt.u32.totalorder %s1700_s25, %s1796_s3 }
 0x1c5   : > { %p1335_p8 = scmp.lt.u32.totalorder %s1333_s28, %s1329_s13  ;;  %p1337_p11 = scmp.lt.u32.totalorder %s1329_s13, %s1700_s25 }
 0x1c6   : > { %p1331_p13 = pnand %p1330_p3, %p1566_p10 }
 0x1c7   : > { %p1336_p12 = por %p1335_p8, %p1334_p6 }
 0x1c8   : > { %p1332_p4 = pneg %p1331_p13 }
 0x1c9   : > { %p1338_p0 = por %p1337_p11, %p1336_p12 }
 0x1cb   : > { %p1339_p5 = pnand %p1338_p0, %p1332_p4 }
 0x1cd   : > { %1342 = shalt.err (!%p1339_p5)
}
 0x1ce   : > { %1146 = dma.vmem_to_hbm [thread:$0]  (%p1566_p10), %s1702_s5, 128, %s1700_s25, %s1710_s21  }
 0x1cf   : > { %s1738_s27 = scalar_lea.hbm %s1797_s4, %s1660_s23  ;;  %v768_v47 = vpop.permute.xlu0 %767  ;;  %s1343_s13 = scalar_lea.vmem %s1741_s26, 128 }
 0x1d0   : > { %770 = vst.msk [vmem:[%s266_s14] sm:$0xff] %vm272_vm1, %v768_v47  ;;  %p1344_p9 = scmp.ne.s32.totalorder %s1741_s26, %s1343_s13  ;;  %s1446_s5 = smov [#allocation10]  }
 0x1d1   : > { %s1347_s25 = sshll.u32 %s1446_s5, 4  ;;  %s1348_s25 = int_to_ptr.vmem [resolvable:$false] %s1347_s25 }
 0x1d2   : > { %p1345_p1 = pnand %p1344_p9, %p1566_p10  ;;  %s1349_s7 = scalar_lea.vmem %s1348_s25, 256 }
 0x1d3   : > { %p1350_p7 = scmp.lt.s32.totalorder %s1741_s26, %s1348_s25  ;;  %p1351_p3 = scmp.lt.s32.totalorder %s1349_s7, %s1343_s13 }
 0x1d4   : > { %p1346_p2 = pneg %p1345_p1 }
 0x1d5   : > { %p1352_p13 = por %p1351_p3, %p1350_p7 }
 0x1d7   : > { %p1353_p4 = pnand %p1352_p13, %p1346_p2 }
 0x1d9   : > { %1356 = shalt.err (!%p1353_p4)
}
 0x1da   : > { %s1357_s10 = scalar_lea.hbm %s1738_s27, 128  ;;  %s1361_s9 = scalar_lea.hbm %s1797_s4, 256 }
 0x1db   : > { %p1358_p6 = scmp.ne.s32.totalorder %s1738_s27, %s1357_s10  ;;  %p1362_p11 = scmp.lt.u32.totalorder %s1738_s27, %s1797_s4 }
 0x1dc   : > { %p1363_p0 = scmp.lt.u32.totalorder %s1361_s9, %s1357_s10  ;;  %p1365_p9 = scmp.lt.u32.totalorder %s1357_s10, %s1738_s27 }
 0x1dd   : > { %p1359_p8 = pnand %p1358_p6, %p1566_p10 }
 0x1de   : > { %p1364_p5 = por %p1363_p0, %p1362_p11 }
 0x1df   : > { %p1360_p12 = pneg %p1359_p8 }
 0x1e0   : > { %p1366_p1 = por %p1365_p9, %p1364_p5 }
 0x1e2   : > { %p1367_p2 = pnand %p1366_p1, %p1360_p12 }
 0x1e4   : > { %1370 = shalt.err (!%p1367_p2)
}
 0x1e5   : > { %1147 = dma.vmem_to_hbm [thread:$0]  (%p1566_p10), %s1741_s26, 128, %s1738_s27, %s1710_s21  }
 0x1e6 PF: > { %s836_s30 = sand.u32 1, %s1413_s15   ;;  %p1813_p7 = scmp.ne.s32.totalorder %s1802_s24, 0 }
 0x1e7   : > { %p1814_p3 = scmp.ge.s32.totalorder %s1433_s20, 2  ;;  %s837_s12 = scalar_lea.sflag [#allocation4], %s836_s30 }
 0x1e9   : > { %p1160_p13 = pnand %p1814_p3, %p1813_p7 }
 0x1eb   : > { %1404 = dma.done.wait (!%p1160_p13), %s837_s12, 128  }
 0x1ec   : > { %1406 = vsyncadd (!%p1160_p13), %s837_s12, 4294967168  ;;  %s845_s18 = sand.u32 1, %s978_s22  }
 0x1ed   : > { %s846_s13 = scalar_lea.sflag [#allocation9], %s845_s18 }
 0x1ee   : > { %1408 = dma.done.wait (!%p1160_p13), %s846_s13, 256  }
 0x1ef   : > { %1410 = vsyncadd (!%p1160_p13), %s846_s13, 4294967040  ;;  %s25_s20 = sadd.s32 1, %s1433_s20   ;;  %s1815_s15 = smov %s1417_s16 }
 0x1f0   : > { %p22_p10 = scmp.ge.s32.totalorder %s25_s20, 4   ;;  %s1816_s16 = smov %s1421_s17 }
 0x1f1   : > { %s1817_s17 = smov %s1575_s8  ;;  %s1818_s18 = smov %s1429_s19 }
 0x1f2   : > { %s1819_s19 = smov %s1821_s29  ;;  %24 = sbr.rel (!%p22_p10) target bundleno = 9 (0x9), region = 109 }
 0x1f9   :  { %860 = vsyncpa [#allocation3], 1 }
 0x1fa   :  { %862 = vsyncpa [#allocation3 + $0x1], 1 }
 0x1fb   :  { %863 = vsyncpa [#allocation6], 1 }
 0x1fc   :  { %864 = vsyncpa [#allocation4], 1 }
 0x1fd   :  { %866 = vsyncpa [#allocation4 + $0x1], 1 }
 0x1fe   :  { %867 = vsyncpa [#allocation9], 1 }
 0x1ff   :  { %869 = vsyncpa [#allocation9 + $0x1], 1 }

</bundles_post_ra>
